<compile_context>
chip_gen: v5e
topology: v5e:2x2
jax: 0.10.0
libtpu: 0.0.40
codegen_flags: <defaults>
</compile_context>

<pallas_src>
import functools

import jax
import jax.numpy as jnp
import numpy as np
from jax.experimental import pallas as pl
from jax.experimental.pallas import tpu as pltpu


def _fused_kernel(p_ref, w1_ref, w2_ref, gb_ref, o_ref, *, inv_cnt, eps):
    """conv1 -> ReLU -> conv2 -> BatchNorm(batch stats) -> ReLU, fully fused.

    p_ref : (C*R*R + 1, L)   composite-5x5 im2col of x + ones row, L = N*H2*W2
    w1_ref: (C*K*K + 1, C*R*R + 1)  zero-scattered conv1 weights, b1 folded in,
                                    plus an identity row (relu(1) == 1)
    w2_ref: (C, C*K*K + 1)   conv2 weights with b2 folded in as last column
    gb_ref: (C, 2)           col 0 = gamma, col 1 = beta
    o_ref : (C, L)           lane-dense output slab
    """
    # conv1 (+ bias) evaluated at every offset of conv2's 3x3 window: one MXU
    # matmul; ReLU keeps the augmented row at exactly 1.
    h = jnp.maximum(
        jnp.dot(w1_ref[...], p_ref[...], preferred_element_type=jnp.float32),
        0.0)
    # conv2 (+ bias, riding on the always-1 row of h): one MXU matmul.
    y = jnp.dot(w2_ref[...], h, preferred_element_type=jnp.float32)

    # BatchNorm2d (training mode): one-pass per-channel batch stats over the
    # lane axis (N, H2, W2), biased variance, then scale/shift + final ReLU.
    s1 = jnp.sum(y, axis=1, keepdims=True)
    s2 = jnp.sum(y * y, axis=1, keepdims=True)
    mean = s1 * inv_cnt
    var = s2 * inv_cnt - mean * mean
    scale = gb_ref[:, 0:1] * jax.lax.rsqrt(var + eps)
    shift = gb_ref[:, 1:2] - mean * scale
    o_ref[...] = jnp.maximum(y * scale + shift, 0.0)


def make_lut_net_forward(w1, b1, w2, b2, gamma, beta, input_shape, *, eps=1e-5):
    """Packs static weights once and returns a jitted forward(x) closure."""
    n, c, h, w = input_shape
    k = int(w1.shape[-1])
    r = 2 * k - 1                               # composite 5x5 receptive field
    h2, w2_out = h - 2 * (k - 1), w - 2 * (k - 1)
    L = n * h2 * w2_out

    # ---- im2col gather indices (pure numpy, constant under jit) ------------
    # P[(ci,u,v), (n,oh,ow)] = x[n, ci, oh+u, ow+v]; last row points at the
    # appended 1.0 so the ones row comes out of the same single gather.
    ci = np.arange(c).reshape(c, 1, 1)
    uu = np.arange(r).reshape(1, r, 1)
    vv = np.arange(r).reshape(1, 1, r)
    row_off = (ci * h * w + uu * w + vv).reshape(c * r * r, 1)
    nn = np.arange(n).reshape(n, 1, 1)
    oh = np.arange(h2).reshape(1, h2, 1)
    ow = np.arange(w2_out).reshape(1, 1, w2_out)
    col_off = (nn * c * h * w + oh * w + ow).reshape(1, L)
    idx = row_off + col_off                                   # (c*r*r, L)
    ones_row = np.full((1, L), n * c * h * w)                 # index of the 1.0
    gather_idx = jnp.asarray(
        np.concatenate([idx, ones_row], axis=0).astype(np.int32))

    # ---- static weight packing (runs once; zero per-call HLOs) -------------
    w1_np = np.asarray(w1, np.float32)
    b1_np = np.asarray(b1, np.float32)
    w2_np = np.asarray(w2, np.float32)
    b2_np = np.asarray(b2, np.float32)

    # W1aug[(co,kh,kw), (cj,u,v)] = w1[co, cj, u-kh, v-kw]  (0 outside window)
    co, kh, kw, cj, dh, dw = np.meshgrid(
        np.arange(c), np.arange(k), np.arange(k),
        np.arange(c), np.arange(k), np.arange(k), indexing="ij")
    w1aug = np.zeros((c * k * k + 1, c * r * r + 1), np.float32)
    w1aug[co * k * k + kh * k + kw,
          cj * r * r + (kh + dh) * r + (kw + dw)] = w1_np[co, cj, dh, dw]
    w1aug[np.arange(c * k * k), c * r * r] = np.repeat(b1_np, k * k)   # b1
    w1aug[c * k * k, c * r * r] = 1.0        # identity row -> relu(1) == 1

    w2aug = np.concatenate(
        [w2_np.reshape(c, c * k * k), b2_np[:, None]], axis=1)        # (c, 28)
    gb = np.stack([np.asarray(gamma, np.float32),
                   np.asarray(beta, np.float32)], axis=1)              # (c, 2)

    w1aug_d = jnp.asarray(w1aug)
    w2aug_d = jnp.asarray(w2aug)
    gb_d = jnp.asarray(gb)

    vmem = pl.BlockSpec(memory_space=pltpu.MemorySpace.VMEM)
    cost = pl.CostEstimate(
        flops=2 * L * ((c * k * k + 1) * (c * r * r + 1) + c * (c * k * k + 1)),
        transcendentals=c,
        bytes_accessed=4 * ((c * r * r + 1) * L            # patches
                            + (c * k * k + 1) * (c * r * r + 1)
                            + c * (c * k * k + 1) + 2 * c  # weights / gb
                            + c * L))                      # output
    kern = functools.partial(_fused_kernel, inv_cnt=1.0 / L, eps=eps)
    call = pl.pallas_call(
        kern,
        out_shape=jax.ShapeDtypeStruct((c, L), jnp.float32),
        in_specs=[vmem] * 4,
        out_specs=vmem,
        cost_estimate=cost,
    )

    @jax.jit
    def forward(x):
        # one concat + one gather: lane-dense (76, L) im2col with ones row
        x1 = jnp.concatenate(
            [x.reshape(-1).astype(jnp.float32), jnp.ones((1,), jnp.float32)])
        patches = jnp.take(x1, gather_idx, axis=0)
        out_flat = call(patches, w1aug_d, w2aug_d, gb_d)
        # (C, N*H2*W2) -> NCHW
        return out_flat.reshape(c, n, h2, w2_out).transpose(1, 0, 2, 3)

    return forward


def _reference(x, w1, b1, w2, b2, gamma, beta, eps=1e-5):
    dn = ("NCHW", "OIHW", "NCHW")
    y = jax.lax.conv_general_dilated(x, w1, (1, 1), "VALID",
                                     dimension_numbers=dn)
    y = jnp.maximum(y + b1.reshape(1, -1, 1, 1), 0.0)
    y = jax.lax.conv_general_dilated(y, w2, (1, 1), "VALID",
                                     dimension_numbers=dn)
    y = y + b2.reshape(1, -1, 1, 1)
    mean = jnp.mean(y, axis=(0, 2, 3), keepdims=True)
    var = jnp.mean((y - mean) ** 2, axis=(0, 2, 3), keepdims=True)
    y = (y - mean) * (gamma.reshape(1, -1, 1, 1) * jax.lax.rsqrt(var + eps))
    y = y + beta.reshape(1, -1, 1, 1)
    return jnp.maximum(y, 0.0)


if __name__ == "__main__":
    N, C, H, W, K = 2, 3, 16, 16, 3   # NCHW; matches Conv2d(3, 3, kernel_size=3)

    key = jax.random.PRNGKey(0)
    kx, k1, kb1, k2, kb2 = jax.random.split(key, 5)

    x = jax.random.normal(kx, (N, C, H, W), dtype=jnp.float32)

    # Deterministic PyTorch-style (kaiming-uniform-ish) init, OIHW weights.
    fan_in = C * K * K
    bound = 1.0 / np.sqrt(fan_in)
    w1 = jax.random.uniform(k1, (C, C, K, K), jnp.float32, -bound, bound)
    b1 = jax.random.uniform(kb1, (C,), jnp.float32, -bound, bound)
    w2 = jax.random.uniform(k2, (C, C, K, K), jnp.float32, -bound, bound)
    b2 = jax.random.uniform(kb2, (C,), jnp.float32, -bound, bound)
    gamma = jnp.ones((C,), jnp.float32)    # BatchNorm2d default affine init
    beta = jnp.zeros((C,), jnp.float32)

    forward = make_lut_net_forward(w1, b1, w2, b2, gamma, beta, x.shape)
    out = jax.block_until_ready(forward(x))

    ref = _reference(x, w1, b1, w2, b2, gamma, beta)
    np.testing.assert_allclose(np.asarray(out), np.asarray(ref),
                               rtol=1e-3, atol=1e-4)
    print("KERNEL_OK")
</pallas_src>

<mosaic_0001>
module attributes {stable_mosaic.version = 11 : i64} {
  func.func @_fused_kernel(%arg0: memref<76x288xf32, #tpu.memory_space<vmem>>, %arg1: memref<28x76xf32, #tpu.memory_space<vmem>>, %arg2: memref<3x28xf32, #tpu.memory_space<vmem>>, %arg3: memref<3x2xf32, #tpu.memory_space<vmem>>, %arg4: memref<3x288xf32, #tpu.memory_space<vmem>>) attributes {dimension_semantics = [], scalar_prefetch = 0 : i64, scratch_operands = 0 : i64, tpu.core_type = #tpu.core_type<tc>} {
    %c0 = arith.constant 0 : index
    %c0_0 = arith.constant 0 : index
    %0 = vector.load %arg1[%c0, %c0_0] : memref<28x76xf32, #tpu.memory_space<vmem>>, vector<28x76xf32>
    %c0_1 = arith.constant 0 : index
    %c0_2 = arith.constant 0 : index
    %1 = vector.load %arg0[%c0_1, %c0_2] : memref<76x288xf32, #tpu.memory_space<vmem>>, vector<76x288xf32>
    %cst = arith.constant dense<0.000000e+00> : vector<28x288xf32>
    %2 = tpu.matmul %0, %1, %cst {dimension_numbers = #tpu.dot_dimension_numbers<[1], [0], [0], [1], [0, 0, 1, 1], [], []>} : vector<28x76xf32>, vector<76x288xf32>, vector<28x288xf32> -> vector<28x288xf32>
    %cst_3 = arith.constant 0.000000e+00 : f32
    %3 = vector.broadcast %cst_3 : f32 to vector<28x288xf32>
    %4 = arith.maximumf %2, %3 : vector<28x288xf32>
    %c0_4 = arith.constant 0 : index
    %c0_5 = arith.constant 0 : index
    %5 = vector.load %arg2[%c0_4, %c0_5] : memref<3x28xf32, #tpu.memory_space<vmem>>, vector<3x28xf32>
    %cst_6 = arith.constant dense<0.000000e+00> : vector<3x288xf32>
    %6 = tpu.matmul %5, %4, %cst_6 {dimension_numbers = #tpu.dot_dimension_numbers<[1], [0], [0], [1], [0, 0, 1, 1], [], []>} : vector<3x28xf32>, vector<28x288xf32>, vector<3x288xf32> -> vector<3x288xf32>
    %cst_7 = arith.constant dense<0.000000e+00> : vector<3xf32>
    %7 = vector.multi_reduction <add>, %6, %cst_7 [1] : vector<3x288xf32> to vector<3xf32>
    %8 = vector.shape_cast %7 : vector<3xf32> to vector<3x1xf32>
    %9 = arith.mulf %6, %6 : vector<3x288xf32>
    %cst_8 = arith.constant dense<0.000000e+00> : vector<3xf32>
    %10 = vector.multi_reduction <add>, %9, %cst_8 [1] : vector<3x288xf32> to vector<3xf32>
    %11 = vector.shape_cast %10 : vector<3xf32> to vector<3x1xf32>
    %cst_9 = arith.constant 0.00347222225 : f32
    %12 = vector.broadcast %cst_9 : f32 to vector<3x1xf32>
    %13 = arith.mulf %8, %12 : vector<3x1xf32>
    %cst_10 = arith.constant 0.00347222225 : f32
    %14 = vector.broadcast %cst_10 : f32 to vector<3x1xf32>
    %15 = arith.mulf %11, %14 : vector<3x1xf32>
    %16 = arith.mulf %13, %13 : vector<3x1xf32>
    %17 = arith.subf %15, %16 : vector<3x1xf32>
    %c0_11 = arith.constant 0 : index
    %c0_12 = arith.constant 0 : index
    %18 = vector.load %arg3[%c0_11, %c0_12] : memref<3x2xf32, #tpu.memory_space<vmem>>, vector<3x1xf32>
    %cst_13 = arith.constant 9.99999974E-6 : f32
    %19 = vector.broadcast %cst_13 : f32 to vector<3x1xf32>
    %20 = arith.addf %17, %19 : vector<3x1xf32>
    %21 = math.rsqrt %20 : vector<3x1xf32>
    %22 = arith.mulf %18, %21 : vector<3x1xf32>
    %c0_14 = arith.constant 0 : index
    %c1 = arith.constant 1 : index
    %23 = vector.load %arg3[%c0_14, %c1] : memref<3x2xf32, #tpu.memory_space<vmem>>, vector<3x1xf32>
    %24 = arith.mulf %13, %22 : vector<3x1xf32>
    %25 = arith.subf %23, %24 : vector<3x1xf32>
    %26 = vector.broadcast %22 : vector<3x1xf32> to vector<3x288xf32>
    %27 = arith.mulf %6, %26 : vector<3x288xf32>
    %28 = vector.broadcast %25 : vector<3x1xf32> to vector<3x288xf32>
    %29 = arith.addf %27, %28 : vector<3x288xf32>
    %cst_15 = arith.constant 0.000000e+00 : f32
    %30 = vector.broadcast %cst_15 : f32 to vector<3x288xf32>
    %31 = arith.maximumf %29, %30 : vector<3x288xf32>
    %c0_16 = arith.constant 0 : index
    %c0_17 = arith.constant 0 : index
    %32 = vector.load %arg4[%c0_16, %c0_17] : memref<3x288xf32, #tpu.memory_space<vmem>>, vector<3x288xf32>
    tpu.vector_store %arg4[%c0_16, %c0_17], %31 {strides = array<i32>} : memref<3x288xf32, #tpu.memory_space<vmem>>, vector<3x288xf32>,
    return
  }
}

</mosaic_0001>

<bundles_post_ra>
// kernel: forward.1
= control target key start
LH: loop header
LB: loop body
LE: loop exit
PB: predicated region body
PF: predicated region fallthrough
CT: control target
= control target key end

     0   :  { %vm64_vm0 = vcmask 1043456   ;;  %vm51_vm1 = vcmask 621568   ;;  %vm174_vm2 = vcmask 228352   ;;  %vm247_vm3 = vcmask 1042432   ;;  %s349_s6 = smov 1   ;;  %s515_s0 = inlined_call_operand.vmem [shape: f32[76,288], index: 0, kind: input, shape index: {}]   ;;  %s516_s1 = inlined_call_operand.vmem [shape: f32[28,76], index: 1, kind: input, shape index: {}]   ;;  %s517_s2 = inlined_call_operand.vmem [shape: f32[3,28], index: 2, kind: input, shape index: {}]   ;;  %s518_s3 = inlined_call_operand.vmem [shape: f32[3,2], index: 3, kind: input, shape index: {}]   ;;  %s519_s4 = inlined_call_operand.vmem [shape: f32[3,288], index: 4, kind: output, shape index: {}]  }
   0x1   :  { %v48_v0 = vld [vmem:[%s515_s0 + $0xd8] sm:$0xf]  ;;  %v45_v1 = vld [vmem:[%s515_s0 + $0xc0] sm:$0xff]  ;;  %v42_v3 = vld [vmem:[%s515_s0 + $0xa8] sm:$0xff]  ;;  %vm251_vm4 = vcmask 256000  }
   0x2   :  { %319 = vmatpush.msk.msra.mxu0 %vm64_vm0, %v48_v0  ;;  %v49_v2 = vld [vmem:[%s515_s0 + $0xe0] sm:$0xf]  ;;  %v50_v4 = vld [vmem:[%s515_s0 + $0xe8] sm:$0xf]  ;;  %v47_v6 = vld [vmem:[%s515_s0 + $0xd0] sm:$0xff] }
   0x3   :  { %324 = vmatpush.msk.msra.mxu1 %vm64_vm0, %v49_v2  ;;  %v46_v5 = vld [vmem:[%s515_s0 + $0xc8] sm:$0xff]  ;;  %329 = vmatpush.msk.msra.mxu2 %vm64_vm0, %v50_v4  ;;  %v43_v7 = vld [vmem:[%s515_s0 + $0xb0] sm:$0xff]  ;;  %v44_v9 = vld [vmem:[%s515_s0 + $0xb8] sm:$0xff] }
   0x4   :  { %81 = vmatpush.msra.mxu0 %v45_v1  ;;  %v39_v8 = vld [vmem:[%s515_s0 + $0x90] sm:$0xff]  ;;  %v40_v10 = vld [vmem:[%s515_s0 + $0x98] sm:$0xff]  ;;  %v41_v12 = vld [vmem:[%s515_s0 + $0xa0] sm:$0xff] }
   0x5   :  { %110 = vmatpush.msra.mxu1 %v46_v5  ;;  %139 = vmatpush.msra.mxu2 %v47_v6  ;;  %v36_v11 = vld [vmem:[%s515_s0 + $0x78] sm:$0xff]  ;;  %v37_v13 = vld [vmem:[%s515_s0 + $0x80] sm:$0xff]  ;;  %v38_v15 = vld [vmem:[%s515_s0 + $0x88] sm:$0xff] }
   0x6   :  { %82 = vmatpush.msra.mxu0 %v42_v3  ;;  %v33_v14 = vld [vmem:[%s515_s0 + $0x60] sm:$0xff]  ;;  %v34_v16 = vld [vmem:[%s515_s0 + $0x68] sm:$0xff]  ;;  %v35_v18 = vld [vmem:[%s515_s0 + $0x70] sm:$0xff] }
   0x7   :  { %111 = vmatpush.msra.mxu1 %v43_v7  ;;  %140 = vmatpush.msra.mxu2 %v44_v9  ;;  %v30_v17 = vld [vmem:[%s515_s0 + $0x48] sm:$0xff]  ;;  %v31_v19 = vld [vmem:[%s515_s0 + $0x50] sm:$0xff]  ;;  %v32_v21 = vld [vmem:[%s515_s0 + $0x58] sm:$0xff] }
   0x8   :  { %83 = vmatpush.msra.mxu0 %v39_v8  ;;  %v27_v20 = vld [vmem:[%s515_s0 + $0x30] sm:$0xff]  ;;  %v28_v22 = vld [vmem:[%s515_s0 + $0x38] sm:$0xff]  ;;  %v29_v24 = vld [vmem:[%s515_s0 + $0x40] sm:$0xff] }
   0x9   :  { %112 = vmatpush.msra.mxu1 %v40_v10  ;;  %141 = vmatpush.msra.mxu2 %v41_v12  ;;  %v24_v23 = vld [vmem:[%s515_s0 + $0x18] sm:$0xff]  ;;  %v25_v25 = vld [vmem:[%s515_s0 + $0x20] sm:$0xff]  ;;  %v26_v27 = vld [vmem:[%s515_s0 + $0x28] sm:$0xff] }
   0xa   :  { %84 = vmatpush.msra.mxu0 %v36_v11  ;;  %v21_v26 = vld [vmem:[%s515_s0] sm:$0xff]  ;;  %v22_v29 = vld [vmem:[%s515_s0 + $0x8] sm:$0xff]  ;;  %v23_v30 = vld [vmem:[%s515_s0 + $0x10] sm:$0xff] }
   0xb   :  { %113 = vmatpush.msra.mxu1 %v37_v13  ;;  %142 = vmatpush.msra.mxu2 %v38_v15  ;;  %v17_v28 = vld [vmem:[%s516_s1] sm:$0xff]  ;;  %v18_v31 = vld [vmem:[%s516_s1 + $0x8] sm:$0xff]  ;;  %v19_v32 = vld [vmem:[%s516_s1 + $0x10] sm:$0xff]  ;;  %v348_v13 = vmov 0  }
   0xc   :  { %85 = vmatpush.msra.mxu0 %v33_v14  ;;  %v20_v33 = vld [vmem:[%s516_s1 + $0x18] sm:$0xf]  ;;  %v173_v50 = vld [vmem:[%s517_s2] sm:$0x7]  ;;  %343 = vset.pattern.permute.xlu1 %v348_v13 }
   0xd   :  { %114 = vmatpush.msra.mxu1 %v34_v16  ;;  %143 = vmatpush.msra.mxu2 %v35_v18 }
   0xe   :  { %86 = vmatpush.msra.mxu0 %v30_v17 }
   0xf   :  { %115 = vmatpush.msra.mxu1 %v31_v19  ;;  %144 = vmatpush.msra.mxu2 %v32_v21 }
  0x10   :  { %87 = vmatpush.msra.mxu0 %v27_v20 }
  0x11   :  { %116 = vmatpush.msra.mxu1 %v28_v22  ;;  %145 = vmatpush.msra.mxu2 %v29_v24  ;;  %v270_v24 = vld [vmem:[%s518_s3] sm:$0x7] }
  0x12   :  { %88 = vmatpush.msra.mxu0 %v24_v23 }
  0x13   :  { %117 = vmatpush.msra.mxu1 %v25_v25  ;;  %146 = vmatpush.msra.mxu2 %v26_v27 }
  0x14   :  { %89 = vmatpush.msra.mxu0 %v21_v26 }
  0x15   :  { %320 = vmatmul.msk.f32.vlgmr.msra.gmra.mxu0 %vm51_vm1, %v17_v28  ;;  %118 = vmatpush.msra.mxu1 %v22_v29  ;;  %v350_v29 = vmov 1  }
  0x16   :  { %325 = vmatmul.msk.f32.vlgmr.msra.gmra.mxu1 %vm51_vm1, %v17_v28  ;;  %147 = vmatpush.msra.mxu2 %v23_v30 }
  0x17   :  { %330 = vmatmul.msk.f32.vlgmr.msra.gmra.mxu2 %vm51_vm1, %v17_v28  ;;  %344 = vset.pattern.permute.xlu2 %v350_v29 }
  0x18   :  { %345 = vset.pattern.permute.xlu0 %v350_v29 }
  0x1d   :  { %321 = vmatmul.msk.f32.gmra.mxu0 %vm51_vm1, %v18_v31 }
  0x1e   :  { %326 = vmatmul.msk.f32.gmra.mxu1 %vm51_vm1, %v18_v31 }
  0x1f   :  { %331 = vmatmul.msk.f32.gmra.mxu2 %vm51_vm1, %v18_v31 }
  0x25   :  { %322 = vmatmul.msk.f32.gmra.mxu0 %vm51_vm1, %v19_v32 }
  0x26   :  { %327 = vmatmul.msk.f32.gmra.mxu1 %vm51_vm1, %v19_v32 }
  0x27   :  { %332 = vmatmul.msk.f32.gmra.mxu2 %vm51_vm1, %v19_v32 }
  0x2d   :  { %323 = vmatmul.msk.f32.gmra.mxu0 %vm51_vm1, %v20_v33 }
  0x2e   :  { %328 = vmatmul.msk.f32.gmra.mxu1 %vm51_vm1, %v20_v33 }
  0x2f   :  { %333 = vmatmul.msk.f32.gmra.mxu2 %vm51_vm1, %v20_v33 }
  0x92   :  { %v91_v34 = vpop.f32.mrf.mxu0 }
  0x93   :  { %v120_v35 = vpop.f32.mrf.mxu1  ;;  %v161_v48 = vmax.f32 %v91_v34, 0.0 }
  0x94   :  { %v162_v55 = vmax.f32 %v120_v35, 0.0 }
  0x9a   :  { %v94_v36 = vpop.f32.mrf.mxu0  ;;  %v149_v37 = vpop.f32.mrf.mxu2 }
  0x9b   :  { %v123_v38 = vpop.f32.mrf.mxu1  ;;  %v164_v47 = vmax.f32 %v94_v36, 0.0  ;;  %v163_v58 = vmax.f32 %v149_v37, 0.0 }
  0x9c   :  { %v165_v53 = vmax.f32 %v123_v38, 0.0 }
  0xa2   :  { %v97_v39 = vpop.f32.mrf.mxu0  ;;  %v152_v40 = vpop.f32.mrf.mxu2 }
  0xa3   :  { %v126_v41 = vpop.f32.mrf.mxu1  ;;  %v167_v45 = vmax.f32 %v97_v39, 0.0  ;;  %v166_v57 = vmax.f32 %v152_v40, 0.0 }
  0xa4   :  { %v168_v51 = vmax.f32 %v126_v41, 0.0 }
  0xaa   :  { %v100_v42 = vpop.f32.mrf.mxu0  ;;  %v155_v44 = vpop.f32.mrf.mxu2 }
  0xab   :  { %v170_v43 = vmax.f32 %v100_v42, 0.0  ;;  %v129_v46 = vpop.f32.mrf.mxu1  ;;  %v169_v56 = vmax.f32 %v155_v44, 0.0 }
  0xac   :  { %v171_v49 = vmax.f32 %v129_v46, 0.0 }
  0xad   :  { %334 = vmatpush.msk.msra.mxu3 %vm64_vm0, %v170_v43 }
  0xaf   :  { %200 = vmatpush.msra.mxu3 %v167_v45 }
  0xb1   :  { %201 = vmatpush.msra.mxu3 %v164_v47 }
  0xb2   :  { %v158_v52 = vpop.f32.mrf.mxu2 }
  0xb3   :  { %202 = vmatpush.msra.mxu3 %v161_v48  ;;  %v172_v54 = vmax.f32 %v158_v52, 0.0 }
  0xb4   :  { %335 = vmatmul.msk.f32.vlgmr.msra.gmra.mxu3 %vm174_vm2, %v173_v50 }
  0xb5   :  { %336 = vmatpush.msk.msrb.mxu3 %vm64_vm0, %v171_v49 }
  0xb7   :  { %220 = vmatpush.msrb.mxu3 %v168_v51 }
  0xb9   :  { %221 = vmatpush.msrb.mxu3 %v165_v53 }
  0xbb   :  { %222 = vmatpush.msrb.mxu3 %v162_v55 }
  0xbc   :  { %337 = vmatmul.msk.f32.vlgmr.msrb.gmra.mxu3 %vm174_vm2, %v173_v50 }
  0xbd   :  { %338 = vmatpush.msk.msra.mxu3 %vm64_vm0, %v172_v54 }
  0xbf   :  { %240 = vmatpush.msra.mxu3 %v169_v56 }
  0xc1   :  { %241 = vmatpush.msra.mxu3 %v166_v57 }
  0xc3   :  { %242 = vmatpush.msra.mxu3 %v163_v58 }
  0xc4   :  { %339 = vmatmul.msk.f32.vlgmr.msra.gmra.mxu3 %vm174_vm2, %v173_v50 }
 0x137   :  { %v204_v59 = vpop.f32.mrf.mxu3 }
 0x138   :  { %v248_v62 = vsel %vm247_vm3, %v204_v59, 0.0  ;;  %v256_v4 = vmul.f32 %v204_v59, %v204_v59 }
 0x13a   :  { %v259_v7 = vsel %vm247_vm3, %v256_v4, 0.0 }
 0x13f   :  { %v224_v60 = vpop.f32.mrf.mxu3 }
 0x140   :  { %v249_v61 = vsel %vm247_vm3, %v224_v60, 0.0  ;;  %v257_v1 = vmul.f32 %v224_v60, %v224_v60 }
 0x141   :  { %v250_v0 = vadd.f32 %v249_v61, %v248_v62 }
 0x142   :  { %v260_v6 = vsel %vm247_vm3, %v257_v1, 0.0 }
 0x143   :  { %v261_v9 = vadd.f32 %v260_v6, %v259_v7 }
 0x147   :  { %v244_v63 = vpop.f32.mrf.mxu3 }
 0x148   :  { %v252_v2 = vsel %vm251_vm4, %v244_v63, 0.0  ;;  %v258_v5 = vmul.f32 %v244_v63, %v244_v63 }
 0x149   :  { %v253_v3 = vadd.f32 %v252_v2, %v250_v0 }
 0x14a   :  { %v262_v8 = vsel %vm251_vm4, %v258_v5, 0.0 }
 0x14b   :  { %254 = vadd.xlane.f32.xlu0 %v253_v3  ;;  %v263_v10 = vadd.f32 %v262_v8, %v261_v9 }
 0x153   :  { %264 = vadd.xlane.f32.xlu0 %v263_v10 }
 0x1be   :  { %v255_v11 = vpop.xlane.xlu0 %254 }
 0x1bf   :  { %v266_v12 = vmul.f32 0.0034722222, %v255_v11 }
 0x1c1   :  { %v268_v15 = vmul.f32 %v266_v12, %v266_v12 }
 0x1c6   :  { %v265_v14 = vpop.xlane.xlu0 %264 }
 0x1c7   :  { %v267_v16 = vmul.f32 0.0034722222, %v265_v14 }
 0x1c9   :  { %v269_v17 = vsub.f32 %v267_v16, %v268_v15 }
 0x1cb   :  { %v271_v18 = vadd.f32 1e-05, %v269_v17 }
 0x1cd   :  { %346 = vrsqrt.f32 %v271_v18  ;;  %vm278_vm6 = vweird.f32 %v271_v18 }
 0x1d3   :  { %v347_v19 = vpop.eup %346 }
 0x1d4   :  { %v273_v20 = vmul.f32 %v347_v19, %v271_v18  ;;  %vm279_vm5 = vweird.f32 %v347_v19 }
 0x1d5   :  { %vm280_vm7 = vmor %vm278_vm6, %vm279_vm5 }
 0x1d6   :  { %v274_v21 = vmul.f32 %v347_v19, %v273_v20 }
 0x1d8   :  { %v275_v22 = vmul.f32 0.5, %v274_v21 }
 0x1da   :  { %v276_v23 = vsub.f32 1.5, %v275_v22 }
 0x1dc   :  { %v277_v25 = vmul.f32 %v347_v19, %v276_v23 }
 0x1de   :  { %v281_v26 = vsel %vm280_vm7, %v347_v19, %v277_v25 }
 0x1df   :  { %v282_v27 = vmul.f32 %v281_v26, %v270_v24 }
 0x1e1   :  { %v283_v28 = vmul.f32 %v282_v27, %v266_v12 }
 0x1e3   :  { %285 = vrot.lane.b32.xlu1 %v283_v28, %s349_s6 }
 0x1eb   :  { %291 = vperm.xlu1 %343, %v282_v27  }
 0x255   :  { %v286_v30 = vpop.permute.xlu1 %285 }
 0x256   :  { %v288_v31 = vsub.f32 %v270_v24, %v286_v30 }
 0x258   :  { %299 = vperm.xlu2 %344, %v288_v31  }
 0x25d   :  { %v292_v32 = vpop.permute.xlu1 %291 }
 0x25e   :  { %v294_v33 = vmul.f32 %v292_v32, %v204_v59  ;;  %v295_v34 = vmul.f32 %v292_v32, %v224_v60  ;;  %v296_v35 = vmul.f32 %v292_v32, %v244_v63 }
 0x2b2   :  { %v300_v36 = vpop.permute.xlu2 %299 }
 0x2b3   :  { %v302_v37 = vadd.f32 %v300_v36, %v294_v33  ;;  %v303_v38 = vadd.f32 %v300_v36, %v295_v34  ;;  %v304_v39 = vadd.f32 %v300_v36, %v296_v35 }
 0x2b5   :  { %v306_v40 = vmax.f32 %v303_v38, 0.0  ;;  %v307_v41 = vmax.f32 %v304_v39, 0.0  ;;  %v305_v42 = vmax.f32 %v302_v37, 0.0 }
 0x2b7   :  { %v310_v43 = vrot.slane %v306_v40, 4  ;;  %314 = vst.msk [vmem:[%s519_s4 + $0x8] sm:$0x7] %vm251_vm4, %v307_v41 }
 0x2b9   :  { %v311_v44 = vsel %vm64_vm0, %v305_v42, %v310_v43 }
 0x2ba   :  { %313 = vst [vmem:[%s519_s4] sm:$0x77] %v311_v44 }

</bundles_post_ra>
